<compile_context>
chip_gen: v7x
topology: tpu7x:2x2x1
jax: 0.10.0
libtpu: 0.0.40
codegen_flags: <defaults>
</compile_context>

<pallas_src>
import functools

import jax
import jax.numpy as jnp
from jax.experimental import pallas as pl
from jax.experimental.pallas import tpu as pltpu


def convlstm_kernel(xcol_ref, wmat_ref, peep_ref, cprev_ref,
                    h_ref, c_ref, acc_ref, *, cout, activation):
    """One (batch, pixel-tile) per grid step (channel-major layout).

    xcol_ref : (1, KCp, TN)    im2col of padded concat([x, h_prev]); row KC == 1.0
    wmat_ref : (4*Cout, KCp)   conv weight, tap-major columns; col KC == bias
    peep_ref : (3*Cout, TN)    packed [w_ci; w_cf; w_co]
    cprev_ref: (1, Cout, TN)
    h_ref, c_ref : (1, Cout, TN) outputs
    acc_ref  : (4*Cout, TN) f32 VMEM scratch holding the conv(+bias) result
    """
    # --- convolution + bias: single lane-dense MXU matmul, f32 accumulation --
    acc_ref[...] = jnp.dot(wmat_ref[...], xcol_ref[0],
                           preferred_element_type=jnp.float32)

    if activation == "tanh":
        act = jnp.tanh
    else:  # 'relu'
        act = lambda v: jnp.maximum(v, 0.0)

    # Gate split = sublane (row) split of the accumulator: no cross-lane work.
    i_conv = acc_ref[0 * cout:1 * cout, :]
    f_conv = acc_ref[1 * cout:2 * cout, :]
    g_conv = acc_ref[2 * cout:3 * cout, :]
    o_conv = acc_ref[3 * cout:4 * cout, :]

    w_ci = peep_ref[0 * cout:1 * cout, :]
    w_cf = peep_ref[1 * cout:2 * cout, :]
    w_co = peep_ref[2 * cout:3 * cout, :]

    # --- LSTM gate math (VPU/EUP), all lane-dense ----------------------------
    c_prev = cprev_ref[0].astype(jnp.float32)
    input_gate = jax.nn.sigmoid(i_conv + w_ci * c_prev)
    forget_gate = jax.nn.sigmoid(f_conv + w_cf * c_prev)
    c_out = forget_gate * c_prev + input_gate * act(g_conv)
    output_gate = jax.nn.sigmoid(o_conv + w_co * c_out)
    h_out = output_gate * act(c_out)

    # Lane-dense stores (last dim = TN, multiple of 128).
    h_ref[0] = h_out.astype(h_ref.dtype)
    c_ref[0] = c_out.astype(c_ref.dtype)


def _pick_pixel_tile(hw, cap):
    """Largest multiple-of-128 divisor of hw that is <= cap (else hw)."""
    best = None
    t = 128
    while t <= min(hw, cap):
        if hw % t == 0:
            best = t
        t += 128
    return best if best is not None else hw


def conv_lstm_cell(x, h_prev, c_prev, params, *, kernel_size, padding,
                   activation="tanh", mxu_dtype=None, block_pixels=1024):
    """Pallas ConvLSTMCell forward.  Inputs/outputs use PyTorch NCHW layout.

    mxu_dtype: optional dtype (e.g. jnp.bfloat16) for the matmul operands;
    accumulation and all gate math stay in f32.
    block_pixels: cap on the lane (pixel) tile size per grid step.
    """
    B, Cin, H, W = x.shape
    Cout = h_prev.shape[1]
    Ctot = Cin + Cout
    k, p = kernel_size, padding

    # The module adds the peephole term elementwise against c_prev, so the
    # conv must be shape preserving (stride 1). Check instead of assuming.
    Ho, Wo = H + 2 * p - k + 1, W + 2 * p - k + 1
    if (Ho, Wo) != (H, W):
        raise ValueError(
            f"ConvLSTMCell requires a shape-preserving conv: conv output "
            f"spatial ({Ho},{Wo}) != state spatial ({H},{W}); "
            f"need 2*padding == kernel_size - 1 with stride 1.")

    HW = H * W
    KC = k * k * Ctot
    # +1 reserves a row in the zero-padded K region for the bias ones-row.
    KCp = ((KC + 1 + 127) // 128) * 128

    TN = _pick_pixel_tile(HW, block_pixels)   # lane tile (pixels per step)
    T = HW // TN

    w_conv = params["conv_w"]              # (4*Cout, Ctot, k, k)  OIHW
    C4 = w_conv.shape[0]
    assert C4 == 4 * Cout

    # --- wrapper-side data prep (plain JAX / XLA, fused under jit) ----------
    xh = jnp.concatenate([x, h_prev], axis=1)                # (B, Ctot, H, W)
    xpad = jnp.pad(xh, ((0, 0), (0, 0), (p, p), (p, p)))

    # im2col, channel-major: row = tap*Ctot + channel, column = y*W + x.
    cols = []
    for dy in range(k):
        for dx in range(k):
            cols.append(xpad[:, :, dy:dy + H, dx:dx + W].reshape(B, Ctot, HW))
    xcol = jnp.concatenate(cols, axis=1)                     # (B, KC, HW)
    xcol = jnp.pad(xcol, ((0, 0), (0, KCp - KC), (0, 0)))
    xcol = xcol.at[:, KC, :].set(1.0)          # ones row -> bias via the matmul

    # (4C, Ctot, k, k) -> (4C, k, k, Ctot) -> (4C, KC): tap-major columns,
    # matching the im2col row order above.  Column KC carries the bias.
    wmat = jnp.transpose(w_conv, (0, 2, 3, 1)).reshape(C4, KC)
    wmat = jnp.pad(wmat, ((0, 0), (0, KCp - KC)))
    wmat = wmat.at[:, KC].set(params["conv_b"].astype(wmat.dtype))

    # Pack the three peephole weights into one lane-dense (3*Cout, HW) block.
    peep = jnp.concatenate([params["w_ci"].reshape(Cout, HW),
                            params["w_cf"].reshape(Cout, HW),
                            params["w_co"].reshape(Cout, HW)],
                           axis=0).astype(jnp.float32)

    cprev_flat = c_prev.reshape(B, Cout, HW)

    if mxu_dtype is not None:
        xcol = xcol.astype(mxu_dtype)
        wmat = wmat.astype(mxu_dtype)

    kernel = functools.partial(convlstm_kernel, cout=Cout,
                               activation=activation)

    out_shape = (jax.ShapeDtypeStruct((B, Cout, HW), x.dtype),
                 jax.ShapeDtypeStruct((B, Cout, HW), x.dtype))

    h_flat, c_flat = pl.pallas_call(
        kernel,
        out_shape=out_shape,
        grid_spec=pltpu.PrefetchScalarGridSpec(
            num_scalar_prefetch=0,
            grid=(B, T),
            in_specs=[
                pl.BlockSpec((1, KCp, TN), lambda b, t: (b, 0, t)),
                pl.BlockSpec((C4, KCp), lambda b, t: (0, 0)),
                pl.BlockSpec((3 * Cout, TN), lambda b, t: (0, t)),
                pl.BlockSpec((1, Cout, TN), lambda b, t: (b, 0, t)),
            ],
            out_specs=[
                pl.BlockSpec((1, Cout, TN), lambda b, t: (b, 0, t)),
                pl.BlockSpec((1, Cout, TN), lambda b, t: (b, 0, t)),
            ],
            scratch_shapes=[pltpu.VMEM((C4, TN), jnp.float32)],
        ),
        compiler_params=pltpu.CompilerParams(
            dimension_semantics=("parallel", "parallel")),
    )(xcol, wmat, peep, cprev_flat)

    # Channel-major throughout -> plain reshapes back to NCHW, no transposes.
    return h_flat.reshape(B, Cout, H, W), c_flat.reshape(B, Cout, H, W)


def ref_forward(x, h_prev, c_prev, params, kernel_size, padding,
                activation="tanh"):
    """Pure-JAX reference mirroring the PyTorch module (NCHW)."""
    xh = jnp.concatenate([x, h_prev], axis=1)
    conv = jax.lax.conv_general_dilated(
        xh, params["conv_w"], window_strides=(1, 1),
        padding=((padding, padding), (padding, padding)),
        dimension_numbers=("NCHW", "OIHW", "NCHW"))
    conv = conv + params["conv_b"][None, :, None, None]
    i_conv, f_conv, c_conv, o_conv = jnp.split(conv, 4, axis=1)
    act = jnp.tanh if activation == "tanh" else lambda v: jnp.maximum(v, 0.0)
    ig = jax.nn.sigmoid(i_conv + params["w_ci"][None] * c_prev)
    fg = jax.nn.sigmoid(f_conv + params["w_cf"][None] * c_prev)
    c_out = fg * c_prev + ig * act(c_conv)
    og = jax.nn.sigmoid(o_conv + params["w_co"][None] * c_out)
    h_out = og * act(c_out)
    return h_out, c_out


def _make_inputs(key, B, Cin, Cout, H, W, ksize):
    Ctot = Cin + Cout
    ks = jax.random.split(key, 8)
    params = {
        "conv_w": 0.1 * jax.random.normal(ks[0], (4 * Cout, Ctot, ksize, ksize),
                                          jnp.float32),
        "conv_b": 0.1 * jax.random.normal(ks[1], (4 * Cout,), jnp.float32),
        "w_ci": 0.1 * jax.random.normal(ks[2], (Cout, H, W), jnp.float32),
        "w_co": 0.1 * jax.random.normal(ks[3], (Cout, H, W), jnp.float32),
        "w_cf": 0.1 * jax.random.normal(ks[4], (Cout, H, W), jnp.float32),
    }
    x = jax.random.normal(ks[5], (B, Cin, H, W), jnp.float32)
    h_prev = jax.random.normal(ks[6], (B, Cout, H, W), jnp.float32)
    c_prev = jax.random.normal(ks[7], (B, Cout, H, W), jnp.float32)
    return params, x, h_prev, c_prev


if __name__ == "__main__":
    key = jax.random.PRNGKey(0)
    k1, k2 = jax.random.split(key)

    # --- main config (matches the module's __init__ semantics) --------------
    B, Cin, Cout, H, W, ksize, pad, activation = 2, 4, 32, 16, 16, 3, 1, "tanh"
    params, x, h_prev, c_prev = _make_inputs(k1, B, Cin, Cout, H, W, ksize)
    h_gold, c_gold = ref_forward(x, h_prev, c_prev, params, ksize, pad,
                                 activation)

    # f32 MXU path (accuracy check).
    cell_f32 = jax.jit(functools.partial(
        conv_lstm_cell, kernel_size=ksize, padding=pad, activation=activation))
    h_out, c_out = cell_f32(x, h_prev, c_prev, params)
    jax.block_until_ready((h_out, c_out))
    assert h_out.shape == (B, Cout, H, W) and c_out.shape == (B, Cout, H, W)
    assert jnp.allclose(h_out, h_gold, atol=1e-3, rtol=1e-3)
    assert jnp.allclose(c_out, c_gold, atol=1e-3, rtol=1e-3)

    # bf16 MXU operands (fast path on v6e/v7x); f32 accumulate + gate math.
    cell_bf16 = jax.jit(functools.partial(
        conv_lstm_cell, kernel_size=ksize, padding=pad, activation=activation,
        mxu_dtype=jnp.bfloat16))
    h_bf, c_bf = cell_bf16(x, h_prev, c_prev, params)
    jax.block_until_ready((h_bf, c_bf))
    assert jnp.allclose(h_bf, h_gold, atol=5e-2, rtol=5e-2)
    assert jnp.allclose(c_bf, c_gold, atol=5e-2, rtol=5e-2)

    # --- second config exercising the pixel-tiling grid axis (T > 1) --------
    B2, Cin2, Cout2, H2, W2 = 2, 3, 8, 32, 32     # HW = 1024, block_pixels=256 -> 4 tiles
    params2, x2, h2, c2 = _make_inputs(k2, B2, Cin2, Cout2, H2, W2, ksize)
    hg2, cg2 = ref_forward(x2, h2, c2, params2, ksize, pad, activation)
    cell_tiled = jax.jit(functools.partial(
        conv_lstm_cell, kernel_size=ksize, padding=pad, activation=activation,
        block_pixels=256))
    ht2, ct2 = cell_tiled(x2, h2, c2, params2)
    jax.block_until_ready((ht2, ct2))
    assert jnp.allclose(ht2, hg2, atol=1e-3, rtol=1e-3)
    assert jnp.allclose(ct2, cg2, atol=1e-3, rtol=1e-3)

    print("KERNEL_OK")
</pallas_src>

<mosaic_0001>
module attributes {stable_mosaic.version = 11 : i64} {
  func.func @convlstm_kernel(%arg0: i32, %arg1: i32, %arg2: memref<1x384x256xf32, #tpu.memory_space<vmem>>, %arg3: memref<128x384xf32, #tpu.memory_space<vmem>>, %arg4: memref<96x256xf32, #tpu.memory_space<vmem>>, %arg5: memref<1x32x256xf32, #tpu.memory_space<vmem>>, %arg6: memref<1x32x256xf32, #tpu.memory_space<vmem>>, %arg7: memref<1x32x256xf32, #tpu.memory_space<vmem>>, %arg8: memref<128x256xf32, #tpu.memory_space<vmem>>) attributes {dimension_semantics = [#tpu.dimension_semantics<parallel>, #tpu.dimension_semantics<parallel>], iteration_bounds = array<i64: 2, 1>, scalar_prefetch = 0 : i64, scratch_operands = 1 : i64, tpu.core_type = #tpu.core_type<tc>, window_params = [{transform_indices = @transform_0, window_bounds = array<i64: 1, 384, 256>}, {pipeline_mode = #tpu.pipeline_mode<synchronous>, transform_indices = @transform_1, window_bounds = array<i64: 128, 384>}, {transform_indices = @transform_2, window_bounds = array<i64: 96, 256>}, {transform_indices = @transform_3, window_bounds = array<i64: 1, 32, 256>}, {transform_indices = @transform_4, window_bounds = array<i64: 1, 32, 256>}, {transform_indices = @transform_5, window_bounds = array<i64: 1, 32, 256>}]} {
    %c0 = arith.constant 0 : index
    %c0_0 = arith.constant 0 : index
    %0 = vector.load %arg3[%c0, %c0_0] : memref<128x384xf32, #tpu.memory_space<vmem>>, vector<128x384xf32>
    %c0_1 = arith.constant 0 : index
    %c0_2 = arith.constant 0 : index
    %c0_3 = arith.constant 0 : index
    %1 = vector.load %arg2[%c0_1, %c0_2, %c0_3] : memref<1x384x256xf32, #tpu.memory_space<vmem>>, vector<1x384x256xf32>
    %2 = vector.shape_cast %1 : vector<1x384x256xf32> to vector<384x256xf32>
    %cst = arith.constant dense<0.000000e+00> : vector<128x256xf32>
    %3 = tpu.matmul %0, %2, %cst {dimension_numbers = #tpu.dot_dimension_numbers<[1], [0], [0], [1], [0, 0, 1, 1], [], []>} : vector<128x384xf32>, vector<384x256xf32>, vector<128x256xf32> -> vector<128x256xf32>
    %c0_4 = arith.constant 0 : index
    %c0_5 = arith.constant 0 : index
    %4 = vector.load %arg8[%c0_4, %c0_5] : memref<128x256xf32, #tpu.memory_space<vmem>>, vector<128x256xf32>
    tpu.vector_store %arg8[%c0_4, %c0_5], %3 {strides = array<i32>} : memref<128x256xf32, #tpu.memory_space<vmem>>, vector<128x256xf32>,
    %c0_6 = arith.constant 0 : index
    %c0_7 = arith.constant 0 : index
    %5 = vector.load %arg8[%c0_6, %c0_7] : memref<128x256xf32, #tpu.memory_space<vmem>>, vector<32x256xf32>
    %c32 = arith.constant 32 : index
    %c0_8 = arith.constant 0 : index
    %6 = vector.load %arg8[%c32, %c0_8] : memref<128x256xf32, #tpu.memory_space<vmem>>, vector<32x256xf32>
    %c64 = arith.constant 64 : index
    %c0_9 = arith.constant 0 : index
    %7 = vector.load %arg8[%c64, %c0_9] : memref<128x256xf32, #tpu.memory_space<vmem>>, vector<32x256xf32>
    %c96 = arith.constant 96 : index
    %c0_10 = arith.constant 0 : index
    %8 = vector.load %arg8[%c96, %c0_10] : memref<128x256xf32, #tpu.memory_space<vmem>>, vector<32x256xf32>
    %c0_11 = arith.constant 0 : index
    %c0_12 = arith.constant 0 : index
    %9 = vector.load %arg4[%c0_11, %c0_12] : memref<96x256xf32, #tpu.memory_space<vmem>>, vector<32x256xf32>
    %c32_13 = arith.constant 32 : index
    %c0_14 = arith.constant 0 : index
    %10 = vector.load %arg4[%c32_13, %c0_14] : memref<96x256xf32, #tpu.memory_space<vmem>>, vector<32x256xf32>
    %c64_15 = arith.constant 64 : index
    %c0_16 = arith.constant 0 : index
    %11 = vector.load %arg4[%c64_15, %c0_16] : memref<96x256xf32, #tpu.memory_space<vmem>>, vector<32x256xf32>
    %c0_17 = arith.constant 0 : index
    %c0_18 = arith.constant 0 : index
    %c0_19 = arith.constant 0 : index
    %12 = vector.load %arg5[%c0_17, %c0_18, %c0_19] : memref<1x32x256xf32, #tpu.memory_space<vmem>>, vector<1x32x256xf32>
    %13 = vector.shape_cast %12 : vector<1x32x256xf32> to vector<32x256xf32>
    %14 = arith.mulf %9, %13 : vector<32x256xf32>
    %15 = arith.addf %5, %14 : vector<32x256xf32>
    %16 = arith.negf %15 : vector<32x256xf32>
    %17 = math.exp %16 : vector<32x256xf32>
    %cst_20 = arith.constant 1.000000e+00 : f32
    %18 = vector.broadcast %cst_20 : f32 to vector<32x256xf32>
    %19 = arith.addf %18, %17 : vector<32x256xf32>
    %20 = arith.divf %18, %19 : vector<32x256xf32>
    %21 = arith.mulf %10, %13 : vector<32x256xf32>
    %22 = arith.addf %6, %21 : vector<32x256xf32>
    %23 = arith.negf %22 : vector<32x256xf32>
    %24 = math.exp %23 : vector<32x256xf32>
    %cst_21 = arith.constant 1.000000e+00 : f32
    %25 = vector.broadcast %cst_21 : f32 to vector<32x256xf32>
    %26 = arith.addf %25, %24 : vector<32x256xf32>
    %27 = arith.divf %25, %26 : vector<32x256xf32>
    %28 = arith.mulf %27, %13 : vector<32x256xf32>
    %29 = math.tanh %7 : vector<32x256xf32>
    %30 = arith.mulf %20, %29 : vector<32x256xf32>
    %31 = arith.addf %28, %30 : vector<32x256xf32>
    %32 = arith.mulf %11, %31 : vector<32x256xf32>
    %33 = arith.addf %8, %32 : vector<32x256xf32>
    %34 = arith.negf %33 : vector<32x256xf32>
    %35 = math.exp %34 : vector<32x256xf32>
    %cst_22 = arith.constant 1.000000e+00 : f32
    %36 = vector.broadcast %cst_22 : f32 to vector<32x256xf32>
    %37 = arith.addf %36, %35 : vector<32x256xf32>
    %38 = arith.divf %36, %37 : vector<32x256xf32>
    %39 = math.tanh %31 : vector<32x256xf32>
    %40 = arith.mulf %38, %39 : vector<32x256xf32>
    %c0_23 = arith.constant 0 : index
    %c0_24 = arith.constant 0 : index
    %c0_25 = arith.constant 0 : index
    %41 = vector.load %arg6[%c0_23, %c0_24, %c0_25] : memref<1x32x256xf32, #tpu.memory_space<vmem>>, vector<1x32x256xf32>
    %42 = vector.shape_cast %41 : vector<1x32x256xf32> to vector<32x256xf32>
    %43 = vector.shape_cast %40 : vector<32x256xf32> to vector<1x32x256xf32>
    tpu.vector_store %arg6[%c0_23, %c0_24, %c0_25], %43 {strides = array<i32>} : memref<1x32x256xf32, #tpu.memory_space<vmem>>, vector<1x32x256xf32>,
    %c0_26 = arith.constant 0 : index
    %c0_27 = arith.constant 0 : index
    %c0_28 = arith.constant 0 : index
    %44 = vector.load %arg7[%c0_26, %c0_27, %c0_28] : memref<1x32x256xf32, #tpu.memory_space<vmem>>, vector<1x32x256xf32>
    %45 = vector.shape_cast %44 : vector<1x32x256xf32> to vector<32x256xf32>
    %46 = vector.shape_cast %31 : vector<32x256xf32> to vector<1x32x256xf32>
    tpu.vector_store %arg7[%c0_26, %c0_27, %c0_28], %46 {strides = array<i32>} : memref<1x32x256xf32, #tpu.memory_space<vmem>>, vector<1x32x256xf32>,
    return
  }
  func.func @transform_0(%arg0: i32, %arg1: i32) -> (i32, i32, i32) {
    %c0_i32 = arith.constant 0 : i32
    %c0_i32_0 = arith.constant 0 : i32
    return %arg0, %c0_i32, %arg1 : i32, i32, i32
  }
  func.func @transform_1(%arg0: i32, %arg1: i32) -> (i32, i32) {
    %c0_i32 = arith.constant 0 : i32
    %c0_i32_0 = arith.constant 0 : i32
    %c0_i32_1 = arith.constant 0 : i32
    return %c0_i32, %c0_i32_0 : i32, i32
  }
  func.func @transform_2(%arg0: i32, %arg1: i32) -> (i32, i32) {
    %c0_i32 = arith.constant 0 : i32
    %c0_i32_0 = arith.constant 0 : i32
    return %c0_i32, %arg1 : i32, i32
  }
  func.func @transform_3(%arg0: i32, %arg1: i32) -> (i32, i32, i32) {
    %c0_i32 = arith.constant 0 : i32
    %c0_i32_0 = arith.constant 0 : i32
    return %arg0, %c0_i32, %arg1 : i32, i32, i32
  }
  func.func @transform_4(%arg0: i32, %arg1: i32) -> (i32, i32, i32) {
    %c0_i32 = arith.constant 0 : i32
    %c0_i32_0 = arith.constant 0 : i32
    return %arg0, %c0_i32, %arg1 : i32, i32, i32
  }
  func.func @transform_5(%arg0: i32, %arg1: i32) -> (i32, i32, i32) {
    %c0_i32 = arith.constant 0 : i32
    %c0_i32_0 = arith.constant 0 : i32
    return %arg0, %c0_i32, %arg1 : i32, i32, i32
  }
}

</mosaic_0001>

<bundles_post_ra>
// kernel: conv_lstm_cell.1
= control target key start
LH: loop header
LB: loop body
LE: loop exit
PB: predicated region body
PF: predicated region fallthrough
CT: control target
= control target key end

     0   :  { %s1713_s18 = smov 0   ;;  %s1715_s19 = smov 0   ;;  %s2285_s0 = inlined_call_operand.vmem [shape: f32[2,384,256], index: 0, kind: input, shape index: {}]   ;;  %s2286_s1 = inlined_call_operand.vmem [shape: f32[128,384], index: 1, kind: input, shape index: {}]   ;;  %s2287_s2 = inlined_call_operand.vmem [shape: f32[96,256], index: 2, kind: input, shape index: {}]   ;;  %s2288_s3 = inlined_call_operand.vmem [shape: f32[2,32,256], index: 3, kind: input, shape index: {}]   ;;  %s2289_s4 = inlined_call_operand.vmem [shape: f32[2,32,256], index: 4, kind: output, shape index: {0}]   ;;  %s2290_s5 = inlined_call_operand.vmem [shape: f32[2,32,256], index: 5, kind: output, shape index: {1}]  }
   0x1   :  { %s1717_s20 = smov 0  }
   0x2 LB: > { %s28_s21 = sadd.s32 1, %s1676_s19  ;;  %p1339_p0 = scmp.ge.s32.totalorder %s1680_s20, 1  ;;  %s1680_s20 = sphi %s1717_s20, %s16_s20   ;;  %s1676_s19 = sphi %s1715_s19, %s2292_s19   ;;  %s1672_s18 = sphi %s1713_s18, %s2291_s18  }
   0x3   : > { %p30_p1 = scmp.ge.s32.totalorder %s28_s21, 2  ;;  %p241_p2 = scmp.lt.s32.totalorder %s1680_s20, 3 }
   0x5   : > { %s2294_s21 = smov (%p30_p1, %s28_s21), 0  ;;  %p242_p3 = pnand %p1339_p0, %p241_p2 }
   0x6   : > { %p301_p4 = scmp.lt.s32.totalorder (!%p242_p3), %s1672_s18, 1  ;;  %v347_v0 = vld [vmem:[%s2286_s1 + $0x8] sm:$0xff] (!%p242_p3)  ;;  %v1682_v1 = vmov (!%p242_p3), 0.0  }
   0x7   : > { %245 = sbr.rel (%p242_p3) target bundleno = 400 (0x190), region = 36  ;;  %715 = vmatprep.mubr.f32.mxu0 (!%p242_p3), %v1682_v1  ;;  %554 = vmatprep.mubr.f32.mxu1 (!%p242_p3), %v347_v0 }
   0xe   : > { %s2296_s18 = smov (!%p301_p4, %s1672_s18), 1 }
   0xf   : > { %s1504_s24 = smul.u32 768, %s2296_s18  ;;  %s1996_s13 = sshll.u32 %s2296_s18, 6 }
  0x10   : > { %s2006_s16 = scalar_lea.vmem %s2288_s3, %s1996_s13  ;;  %s2185_s8 = scalar_lea.vmem %s2290_s5, %s1996_s13 }
  0x11   : > { %s1741_s27 = scalar_lea.vmem %s2285_s0, %s1504_s24  ;;  %s2266_s6 = scalar_lea.vmem %s2289_s4, %s1996_s13 }
  0x12   : > { %v395_v2 = vld [vmem:[%s1741_s27 + $0x8] sm:$0xff]  ;;  %v397_v3 = vld [vmem:[%s1741_s27 + $0x18] sm:$0xff]  ;;  %v394_v4 = vld [vmem:[%s1741_s27] sm:$0xff] }
  0x13   : > { %v1376_v5 = vpack.c.bf16 %v397_v3, %v395_v2  ;;  %v396_v6 = vld [vmem:[%s1741_s27 + $0x10] sm:$0xff]  ;;  %v399_v7 = vld [vmem:[%s1741_s27 + $0x28] sm:$0xff]  ;;  %v401_v8 = vld [vmem:[%s1741_s27 + $0x38] sm:$0xff] }
  0x14   : > { %v1378_v9 = vpack.c.bf16 %v396_v6, %v394_v4  ;;  %v1380_v10 = vpack.c.bf16 %v401_v8, %v399_v7  ;;  %v398_v11 = vld [vmem:[%s1741_s27 + $0x20] sm:$0xff]  ;;  %v400_v12 = vld [vmem:[%s1741_s27 + $0x30] sm:$0xff]  ;;  %v403_v13 = vld [vmem:[%s1741_s27 + $0x48] sm:$0xff] }
  0x15   : > { %1377 = vmatprep.subr.bf16.mxu1 %v1376_v5  ;;  %v405_v14 = vld [vmem:[%s1741_s27 + $0x58] sm:$0xff]  ;;  %v1382_v15 = vpack.c.bf16 %v400_v12, %v398_v11  ;;  %v402_v17 = vld [vmem:[%s1741_s27 + $0x40] sm:$0xff]  ;;  %v404_v18 = vld [vmem:[%s1741_s27 + $0x50] sm:$0xff] }
  0x16   : > { %1379 = vmatpush1.bf16.msra.mxu1 %v1378_v9  ;;  %v1384_v16 = vpack.c.bf16 %v405_v14, %v403_v13  ;;  %v407_v19 = vld [vmem:[%s1741_s27 + $0x68] sm:$0xff]  ;;  %v409_v20 = vld [vmem:[%s1741_s27 + $0x78] sm:$0xff]  ;;  %v1386_v21 = vpack.c.bf16 %v404_v18, %v402_v17  ;;  %v406_v23 = vld [vmem:[%s1741_s27 + $0x60] sm:$0xff] }
  0x17   : > { %1381 = vmatprep.subr.bf16.mxu1 %v1380_v10  ;;  %v1388_v22 = vpack.c.bf16 %v409_v20, %v407_v19  ;;  %v408_v24 = vld [vmem:[%s1741_s27 + $0x70] sm:$0xff]  ;;  %v411_v25 = vld [vmem:[%s1741_s27 + $0x88] sm:$0xff]  ;;  %v413_v26 = vld [vmem:[%s1741_s27 + $0x98] sm:$0xff] }
  0x18   : > { %v459_v27 = vld [vmem:[%s1741_s27 + $0x208] sm:$0xff]  ;;  %v461_v28 = vld [vmem:[%s1741_s27 + $0x218] sm:$0xff]  ;;  %v1390_v29 = vpack.c.bf16 %v408_v24, %v406_v23  ;;  %v410_v30 = vld [vmem:[%s1741_s27 + $0x80] sm:$0xff]  ;;  %v1392_v34 = vpack.c.bf16 %v413_v26, %v411_v25 }
  0x19   : > { %v1440_v31 = vpack.c.bf16 %v461_v28, %v459_v27  ;;  %v458_v32 = vld [vmem:[%s1741_s27 + $0x200] sm:$0xff]  ;;  %v460_v33 = vld [vmem:[%s1741_s27 + $0x210] sm:$0xff]  ;;  %v463_v37 = vld [vmem:[%s1741_s27 + $0x228] sm:$0xff] }
  0x1a   : > { %1383 = vmatpush1.bf16.msra.mxu1 %v1382_v15  ;;  %v412_v35 = vld [vmem:[%s1741_s27 + $0x90] sm:$0xff]  ;;  %v1442_v36 = vpack.c.bf16 %v460_v33, %v458_v32  ;;  %v465_v38 = vld [vmem:[%s1741_s27 + $0x238] sm:$0xff]  ;;  %v415_v39 = vld [vmem:[%s1741_s27 + $0xa8] sm:$0xff] }
  0x1b   : > { %1385 = vmatprep.subr.bf16.mxu1 %v1384_v16  ;;  %v417_v40 = vld [vmem:[%s1741_s27 + $0xb8] sm:$0xff]  ;;  %1441 = vmatprep.subr.bf16.mxu0 %v1440_v31  ;;  %v1444_v41 = vpack.c.bf16 %v465_v38, %v463_v37  ;;  %v462_v42 = vld [vmem:[%s1741_s27 + $0x220] sm:$0xff]  ;;  %v464_v43 = vld [vmem:[%s1741_s27 + $0x230] sm:$0xff]  ;;  %v1394_v44 = vpack.c.bf16 %v412_v35, %v410_v30 }
  0x1c   : > { %1443 = vmatpush1.bf16.msra.mxu0 %v1442_v36  ;;  %v414_v45 = vld [vmem:[%s1741_s27 + $0xa0] sm:$0xff]  ;;  %v1446_v46 = vpack.c.bf16 %v464_v43, %v462_v42  ;;  %v467_v47 = vld [vmem:[%s1741_s27 + $0x248] sm:$0xff]  ;;  %v469_v48 = vld [vmem:[%s1741_s27 + $0x258] sm:$0xff]  ;;  %v1396_v49 = vpack.c.bf16 %v417_v40, %v415_v39 }
  0x1d   : > { %1445 = vmatprep.subr.bf16.mxu0 %v1444_v41  ;;  %v416_v50 = vld [vmem:[%s1741_s27 + $0xb0] sm:$0xff]  ;;  %v1448_v51 = vpack.c.bf16 %v469_v48, %v467_v47  ;;  %v466_v52 = vld [vmem:[%s1741_s27 + $0x240] sm:$0xff]  ;;  %v419_v54 = vld [vmem:[%s1741_s27 + $0xc8] sm:$0xff] }
  0x1e   : > { %1387 = vmatpush1.bf16.msra.mxu1 %v1386_v21  ;;  %v468_v53 = vld [vmem:[%s1741_s27 + $0x250] sm:$0xff]  ;;  %v421_v55 = vld [vmem:[%s1741_s27 + $0xd8] sm:$0xff]  ;;  %v471_v56 = vld [vmem:[%s1741_s27 + $0x268] sm:$0xff]  ;;  %v1398_v59 = vpack.c.bf16 %v416_v50, %v414_v45 }
  0x1f   : > { %1389 = vmatprep.subr.bf16.mxu1 %v1388_v22  ;;  %v1450_v57 = vpack.c.bf16 %v468_v53, %v466_v52  ;;  %v473_v58 = vld [vmem:[%s1741_s27 + $0x278] sm:$0xff]  ;;  %v418_v60 = vld [vmem:[%s1741_s27 + $0xc0] sm:$0xff]  ;;  %v472_v63 = vld [vmem:[%s1741_s27 + $0x270] sm:$0xff]  ;;  %v1400_v0 = vpack.c.bf16 %v421_v55, %v419_v54 }
  0x20   : > { %1447 = vmatpush1.bf16.msra.mxu0 %v1446_v46  ;;  %v1452_v61 = vpack.c.bf16 %v473_v58, %v471_v56  ;;  %v470_v62 = vld [vmem:[%s1741_s27 + $0x260] sm:$0xff]  ;;  %v420_v2 = vld [vmem:[%s1741_s27 + $0xd0] sm:$0xff]  ;;  %v475_v3 = vld [vmem:[%s1741_s27 + $0x288] sm:$0xff] }
  0x21   : > { %1449 = vmatprep.subr.bf16.mxu0 %v1448_v51  ;;  %v477_v4 = vld [vmem:[%s1741_s27 + $0x298] sm:$0xff]  ;;  %v423_v5 = vld [vmem:[%s1741_s27 + $0xe8] sm:$0xff]  ;;  %v1454_v7 = vpack.c.bf16 %v472_v63, %v470_v62  ;;  %v1402_v8 = vpack.c.bf16 %v420_v2, %v418_v60  ;;  %v422_v9 = vld [vmem:[%s1741_s27 + $0xe0] sm:$0xff] }
  0x22   : > { %1391 = vmatpush1.bf16.msra.mxu1 %v1390_v29  ;;  %v425_v6 = vld [vmem:[%s1741_s27 + $0xf8] sm:$0xff]  ;;  %v1456_v10 = vpack.c.bf16 %v477_v4, %v475_v3  ;;  %v474_v11 = vld [vmem:[%s1741_s27 + $0x280] sm:$0xff]  ;;  %v476_v12 = vld [vmem:[%s1741_s27 + $0x290] sm:$0xff] }
  0x23   : > { %1393 = vmatprep.subr.bf16.mxu1 %v1392_v34  ;;  %v1404_v13 = vpack.c.bf16 %v425_v6, %v423_v5  ;;  %v424_v14 = vld [vmem:[%s1741_s27 + $0xf0] sm:$0xff]  ;;  %v479_v15 = vld [vmem:[%s1741_s27 + $0x2a8] sm:$0xff]  ;;  %v481_v16 = vld [vmem:[%s1741_s27 + $0x2b8] sm:$0xff]  ;;  %v1458_v19 = vpack.c.bf16 %v476_v12, %v474_v11 }
  0x24   : > { %1451 = vmatpush1.bf16.msra.mxu0 %v1450_v57  ;;  %v427_v17 = vld [vmem:[%s1741_s27 + $0x108] sm:$0xff]  ;;  %v429_v18 = vld [vmem:[%s1741_s27 + $0x118] sm:$0xff]  ;;  %v1406_v20 = vpack.c.bf16 %v424_v14, %v422_v9  ;;  %v426_v21 = vld [vmem:[%s1741_s27 + $0x100] sm:$0xff]  ;;  %v1460_v22 = vpack.c.bf16 %v481_v16, %v479_v15 }
  0x25   : > { %1453 = vmatprep.subr.bf16.mxu0 %v1452_v61  ;;  %v478_v23 = vld [vmem:[%s1741_s27 + $0x2a0] sm:$0xff]  ;;  %v480_v24 = vld [vmem:[%s1741_s27 + $0x2b0] sm:$0xff]  ;;  %v1408_v25 = vpack.c.bf16 %v429_v18, %v427_v17  ;;  %v483_v27 = vld [vmem:[%s1741_s27 + $0x2c8] sm:$0xff] }
  0x26   : > { %1395 = vmatpush1.bf16.msra.mxu1 %v1394_v44  ;;  %v428_v26 = vld [vmem:[%s1741_s27 + $0x110] sm:$0xff]  ;;  %v485_v28 = vld [vmem:[%s1741_s27 + $0x2d8] sm:$0xff]  ;;  %v431_v29 = vld [vmem:[%s1741_s27 + $0x128] sm:$0xff]  ;;  %v1462_v31 = vpack.c.bf16 %v480_v24, %v478_v23 }
  0x27   : > { %1397 = vmatprep.subr.bf16.mxu1 %v1396_v49  ;;  %v433_v30 = vld [vmem:[%s1741_s27 + $0x138] sm:$0xff]  ;;  %v1410_v32 = vpack.c.bf16 %v428_v26, %v426_v21  ;;  %v430_v33 = vld [vmem:[%s1741_s27 + $0x120] sm:$0xff]  ;;  %v1464_v34 = vpack.c.bf16 %v485_v28, %v483_v27  ;;  %v484_v36 = vld [vmem:[%s1741_s27 + $0x2d0] sm:$0xff] }
  0x28   : > { %1455 = vmatpush1.bf16.msra.mxu0 %v1454_v7  ;;  %v482_v35 = vld [vmem:[%s1741_s27 + $0x2c0] sm:$0xff]  ;;  %v1412_v37 = vpack.c.bf16 %v433_v30, %v431_v29  ;;  %v432_v38 = vld [vmem:[%s1741_s27 + $0x130] sm:$0xff]  ;;  %v487_v39 = vld [vmem:[%s1741_s27 + $0x2e8] sm:$0xff] }
  0x29   : > { %1457 = vmatprep.subr.bf16.mxu0 %v1456_v10  ;;  %v489_v40 = vld [vmem:[%s1741_s27 + $0x2f8] sm:$0xff]  ;;  %v435_v41 = vld [vmem:[%s1741_s27 + $0x148] sm:$0xff]  ;;  %v1466_v43 = vpack.c.bf16 %v484_v36, %v482_v35  ;;  %v1414_v44 = vpack.c.bf16 %v432_v38, %v430_v33  ;;  %v486_v46 = vld [vmem:[%s1741_s27 + $0x2e0] sm:$0xff] }
  0x2a   : > { %1399 = vmatpush1.bf16.msra.mxu1 %v1398_v59  ;;  %v437_v42 = vld [vmem:[%s1741_s27 + $0x158] sm:$0xff]  ;;  %v1468_v45 = vpack.c.bf16 %v489_v40, %v487_v39  ;;  %v488_v47 = vld [vmem:[%s1741_s27 + $0x2f0] sm:$0xff]  ;;  %v434_v49 = vld [vmem:[%s1741_s27 + $0x140] sm:$0xff] }
  0x2b   : > { %1401 = vmatprep.subr.bf16.mxu1 %v1400_v0  ;;  %v1416_v48 = vpack.c.bf16 %v437_v42, %v435_v41  ;;  %v436_v50 = vld [vmem:[%s1741_s27 + $0x150] sm:$0xff]  ;;  %v439_v51 = vld [vmem:[%s1741_s27 + $0x168] sm:$0xff]  ;;  %v441_v52 = vld [vmem:[%s1741_s27 + $0x178] sm:$0xff]  ;;  %v1470_v53 = vpack.c.bf16 %v488_v47, %v486_v46 }
  0x2c   : > { %1459 = vmatpush1.bf16.msra.mxu0 %v1458_v19  ;;  %v1418_v54 = vpack.c.bf16 %v436_v50, %v434_v49  ;;  %v1420_v55 = vpack.c.bf16 %v441_v52, %v439_v51  ;;  %v438_v56 = vld [vmem:[%s1741_s27 + $0x160] sm:$0xff]  ;;  %v440_v57 = vld [vmem:[%s1741_s27 + $0x170] sm:$0xff]  ;;  %v443_v58 = vld [vmem:[%s1741_s27 + $0x188] sm:$0xff] }
  0x2d   : > { %1461 = vmatprep.subr.bf16.mxu0 %v1460_v22  ;;  %v445_v59 = vld [vmem:[%s1741_s27 + $0x198] sm:$0xff]  ;;  %v348_v60 = vld [vmem:[%s2286_s1 + $0x10] sm:$0xff]  ;;  %v1422_v61 = vpack.c.bf16 %v440_v57, %v438_v56  ;;  %v442_v63 = vld [vmem:[%s1741_s27 + $0x180] sm:$0xff] }
  0x2e   : > { %1403 = vmatpush1.bf16.msra.mxu1 %v1402_v8  ;;  %v1424_v62 = vpack.c.bf16 %v445_v59, %v443_v58  ;;  %v444_v0 = vld [vmem:[%s1741_s27 + $0x190] sm:$0xff]  ;;  %v447_v2 = vld [vmem:[%s1741_s27 + $0x1a8] sm:$0xff]  ;;  %v449_v3 = vld [vmem:[%s1741_s27 + $0x1b8] sm:$0xff] }
  0x2f   : > { %1405 = vmatprep.subr.bf16.mxu1 %v1404_v13  ;;  %v351_v4 = vld [vmem:[%s2286_s1 + $0x28] sm:$0xff]  ;;  %v1426_v5 = vpack.c.bf16 %v444_v0, %v442_v63  ;;  %v1428_v6 = vpack.c.bf16 %v449_v3, %v447_v2  ;;  %v446_v7 = vld [vmem:[%s1741_s27 + $0x1a0] sm:$0xff]  ;;  %v448_v8 = vld [vmem:[%s1741_s27 + $0x1b0] sm:$0xff] }
  0x30   : > { %1463 = vmatpush1.bf16.msra.mxu0 %v1462_v31  ;;  %v451_v9 = vld [vmem:[%s1741_s27 + $0x1c8] sm:$0xff]  ;;  %v453_v10 = vld [vmem:[%s1741_s27 + $0x1d8] sm:$0xff]  ;;  %v354_v11 = vld [vmem:[%s2286_s1 + $0x40] sm:$0xff]  ;;  %v1430_v12 = vpack.c.bf16 %v448_v8, %v446_v7 }
  0x31   : > { %1465 = vmatprep.subr.bf16.mxu0 %v1464_v34  ;;  %v1432_v13 = vpack.c.bf16 %v453_v10, %v451_v9  ;;  %v450_v14 = vld [vmem:[%s1741_s27 + $0x1c0] sm:$0xff]  ;;  %v452_v15 = vld [vmem:[%s1741_s27 + $0x1d0] sm:$0xff]  ;;  %v455_v16 = vld [vmem:[%s1741_s27 + $0x1e8] sm:$0xff] }
  0x32   : > { %1407 = vmatpush1.bf16.msra.mxu1 %v1406_v20  ;;  %v457_v17 = vld [vmem:[%s1741_s27 + $0x1f8] sm:$0xff]  ;;  %v1434_v19 = vpack.c.bf16 %v452_v15, %v450_v14  ;;  %v454_v21 = vld [vmem:[%s1741_s27 + $0x1e0] sm:$0xff]  ;;  %v456_v22 = vld [vmem:[%s1741_s27 + $0x1f0] sm:$0xff] }
  0x33   : > { %1409 = vmatprep.subr.bf16.mxu1 %v1408_v25  ;;  %v357_v18 = vld [vmem:[%s2286_s1 + $0x58] sm:$0xff]  ;;  %v1436_v20 = vpack.c.bf16 %v457_v17, %v455_v16  ;;  %v360_v23 = vld [vmem:[%s2286_s1 + $0x70] sm:$0xff]  ;;  %v1438_v24 = vpack.c.bf16 %v456_v22, %v454_v21  ;;  %v363_v25 = vld [vmem:[%s2286_s1 + $0x88] sm:$0xff] }
  0x34   : > { %1467 = vmatpush1.bf16.msra.mxu0 %v1466_v43  ;;  %v346_v26 = vld [vmem:[%s2286_s1] sm:$0xff]  ;;  %v349_v29 = vld [vmem:[%s2286_s1 + $0x18] sm:$0xff]  ;;  %v356_v33 = vld [vmem:[%s2286_s1 + $0x50] sm:$0xff] }
  0x35   : > { %1469 = vmatprep.subr.bf16.mxu0 %v1468_v45  ;;  %v350_v27 = vld [vmem:[%s2286_s1 + $0x20] sm:$0xff]  ;;  %v353_v30 = vld [vmem:[%s2286_s1 + $0x38] sm:$0xff]  ;;  %v372_v34 = vld [vmem:[%s2286_s1 + $0xd0] sm:$0xff] }
  0x36   : > { %1411 = vmatpush1.bf16.msra.mxu1 %v1410_v32  ;;  %v366_v28 = vld [vmem:[%s2286_s1 + $0xa0] sm:$0xff]  ;;  %v369_v31 = vld [vmem:[%s2286_s1 + $0xb8] sm:$0xff]  ;;  %v352_v32 = vld [vmem:[%s2286_s1 + $0x30] sm:$0xff] }
  0x37   : > { %1413 = vmatprep.subr.bf16.mxu1 %v1412_v37  ;;  %v355_v35 = vld [vmem:[%s2286_s1 + $0x48] sm:$0xff]  ;;  %v358_v38 = vld [vmem:[%s2286_s1 + $0x60] sm:$0xff]  ;;  %v361_v41 = vld [vmem:[%s2286_s1 + $0x78] sm:$0xff] }
  0x38   : > { %1471 = vmatpush1.bf16.msra.mxu0 %v1470_v53  ;;  %v359_v36 = vld [vmem:[%s2286_s1 + $0x68] sm:$0xff]  ;;  %v362_v39 = vld [vmem:[%s2286_s1 + $0x80] sm:$0xff]  ;;  %v365_v42 = vld [vmem:[%s2286_s1 + $0x98] sm:$0xff] }
  0x39   : > { %v375_v37 = vld [vmem:[%s2286_s1 + $0xe8] sm:$0xff]  ;;  %v378_v40 = vld [vmem:[%s2286_s1 + $0x100] sm:$0xff]  ;;  %v381_v43 = vld [vmem:[%s2286_s1 + $0x118] sm:$0xff] }
  0x3a   : > { %1415 = vmatpush1.bf16.msra.mxu1 %v1414_v44  ;;  %v364_v44 = vld [vmem:[%s2286_s1 + $0x90] sm:$0xff]  ;;  %v367_v47 = vld [vmem:[%s2286_s1 + $0xa8] sm:$0xff]  ;;  %v370_v50 = vld [vmem:[%s2286_s1 + $0xc0] sm:$0xff] }
  0x3b   : > { %1417 = vmatprep.subr.bf16.mxu1 %v1416_v48  ;;  %716 = vmatmul.mubr.f32.vlgmr.msra.gmra.mrb[0].mxu0 %v348_v60  ;;  %v368_v45 = vld [vmem:[%s2286_s1 + $0xb0] sm:$0xff]  ;;  %v371_v48 = vld [vmem:[%s2286_s1 + $0xc8] sm:$0xff]  ;;  %v374_v51 = vld [vmem:[%s2286_s1 + $0xe0] sm:$0xff] }
  0x3c   : > { %721 = vmatprep.mubr.f32.mxu0 %v1682_v1  ;;  %v384_v46 = vld [vmem:[%s2286_s1 + $0x130] sm:$0xff]  ;;  %v387_v49 = vld [vmem:[%s2286_s1 + $0x148] sm:$0xff]  ;;  %v390_v52 = vld [vmem:[%s2286_s1 + $0x160] sm:$0xff] }
  0x3d   : > { %v373_v53 = vld [vmem:[%s2286_s1 + $0xd8] sm:$0xff]  ;;  %v376_v56 = vld [vmem:[%s2286_s1 + $0xf0] sm:$0xff]  ;;  %v383_v58 = vld [vmem:[%s2286_s1 + $0x128] sm:$0xff] }
  0x3e   : > { %1419 = vmatpush1.bf16.msra.mxu1 %v1418_v54  ;;  %v377_v54 = vld [vmem:[%s2286_s1 + $0xf8] sm:$0xff]  ;;  %v380_v57 = vld [vmem:[%s2286_s1 + $0x110] sm:$0xff]  ;;  %v382_v59 = vld [vmem:[%s2286_s1 + $0x120] sm:$0xff] }
  0x3f   : > { %1421 = vmatprep.subr.bf16.mxu1 %v1420_v55  ;;  %722 = vmatmul.mubr.f32.gmra.mrb[2].mxu0 %v351_v4  ;;  %v393_v55 = vld [vmem:[%s2286_s1 + $0x178] sm:$0xff]  ;;  %v386_v60 = vld [vmem:[%s2286_s1 + $0x140] sm:$0xff]  ;;  %v388_v63 = vld [vmem:[%s2286_s1 + $0x150] sm:$0xff] }
  0x40   : > { %727 = vmatprep.mubr.f32.mxu0 %v1682_v1  ;;  %v392_v0 = vld [vmem:[%s2286_s1 + $0x170] sm:$0xff]  ;;  %v391_v2 = vld [vmem:[%s2286_s1 + $0x168] sm:$0xff] }
  0x41   : > { %v877_v15 = vld [vmem:[%s2287_s2 + $0x8] sm:$0xff]  ;;  %v878_v21 = vld [vmem:[%s2287_s2 + $0x10] sm:$0xff] }
  0x42   : > { %1423 = vmatpush1.bf16.msra.mxu1 %v1422_v61  ;;  %v385_v61 = vld [vmem:[%s2286_s1 + $0x138] sm:$0xff]  ;;  %v2022_v16 = vld [vmem:[%s2006_s16 + $0x8] sm:$0xff]  ;;  %v2032_v22 = vld [vmem:[%s2006_s16 + $0x10] sm:$0xff] }
  0x43   : > { %1425 = vmatprep.subr.bf16.mxu1 %v1424_v62  ;;  %728 = vmatmul.mubr.f32.gmra.mrb[4].mxu0 %v354_v11  ;;  %v389_v62 = vld [vmem:[%s2286_s1 + $0x158] sm:$0xff] }
  0x44   : > { %733 = vmatprep.mubr.f32.mxu0 %v1682_v1 }
  0x46   : > { %1427 = vmatpush1.bf16.msra.mxu1 %v1426_v5 }
  0x47   : > { %1429 = vmatprep.subr.bf16.mxu1 %v1428_v6  ;;  %734 = vmatmul.mubr.f32.gmra.mrb[6].mxu0 %v357_v18 }
  0x48   : > { %739 = vmatprep.mubr.f32.mxu0 %v1682_v1 }
  0x4a   : > { %1431 = vmatpush1.bf16.msra.mxu1 %v1430_v12  ;;  %v876_v12 = vld [vmem:[%s2287_s2] sm:$0xff] }
  0x4b   : > { %1433 = vmatprep.subr.bf16.mxu1 %v1432_v13  ;;  %740 = vmatmul.mubr.f32.gmra.mrb[8].mxu0 %v360_v23  ;;  %v2014_v13 = vld [vmem:[%s2006_s16] sm:$0xff] }
  0x4c   : > { %745 = vmatprep.mubr.f32.mxu0 %v1682_v1  ;;  %v908_v17 = vmul.f32 %v2014_v13, %v876_v12 }
  0x4e   : > { %1435 = vmatpush1.bf16.msra.mxu1 %v1434_v19 }
  0x4f   : > { %1437 = vmatprep.subr.bf16.mxu1 %v1436_v20  ;;  %746 = vmatmul.mubr.f32.gmra.mrb[10].mxu0 %v363_v25  ;;  %v909_v20 = vmul.f32 %v2022_v16, %v877_v15 }
  0x50   : > { %751 = vmatprep.mubr.f32.mxu0 %v1682_v1 }
  0x52   : > { %1439 = vmatpush1.bf16.msra.mxu1 %v1438_v24 }
  0x53   : > { %752 = vmatmul.mubr.f32.gmra.mrb[12].mxu0 %v366_v28 }
  0x54   : > { %757 = vmatprep.mubr.f32.mxu0 %v1682_v1 }
  0x55   : > { %555 = vmatmul.mubr.f32.vlgmr.msra.gmra.mrb[0].mxu1 %v346_v26  ;;  %v879_v26 = vld [vmem:[%s2287_s2 + $0x18] sm:$0xff] }
  0x56   : > { %560 = vmatprep.mubr.f32.mxu1 %v350_v27  ;;  %v2040_v27 = vld [vmem:[%s2006_s16 + $0x18] sm:$0xff] }
  0x57   : > { %758 = vmatmul.mubr.f32.gmra.mrb[14].mxu0 %v369_v31 }
  0x58   : > { %763 = vmatprep.mubr.f32.mxu0 %v1682_v1 }
  0x59   : > { %561 = vmatmul.mubr.f32.gmra.mrb[2].mxu1 %v349_v29 }
  0x5a   : > { %566 = vmatprep.mubr.f32.mxu1 %v353_v30  ;;  %v910_v30 = vmul.f32 %v2032_v22, %v878_v21 }
  0x5b   : > { %764 = vmatmul.mubr.f32.gmra.mrb[16].mxu0 %v372_v34  ;;  %v911_v34 = vmul.f32 %v2040_v27, %v879_v26 }
  0x5c   : > { %769 = vmatprep.mubr.f32.mxu0 %v1682_v1 }
  0x5d   : > { %567 = vmatmul.mubr.f32.gmra.mrb[4].mxu1 %v352_v32 }
  0x5e   : > { %572 = vmatprep.mubr.f32.mxu1 %v356_v33 }
  0x5f   : > { %770 = vmatmul.mubr.f32.gmra.mrb[18].mxu0 %v375_v37 }
  0x60   : > { %775 = vmatprep.mubr.f32.mxu0 %v1682_v1 }
  0x61   : > { %573 = vmatmul.mubr.f32.gmra.mrb[6].mxu1 %v355_v35  ;;  %v880_v35 = vld [vmem:[%s2287_s2 + $0x20] sm:$0xff] }
  0x62   : > { %578 = vmatprep.mubr.f32.mxu1 %v359_v36  ;;  %v2050_v36 = vld [vmem:[%s2006_s16 + $0x20] sm:$0xff] }
  0x63   : > { %776 = vmatmul.mubr.f32.gmra.mrb[20].mxu0 %v378_v40 }
  0x64   : > { %781 = vmatprep.mubr.f32.mxu0 %v1682_v1 }
  0x65   : > { %579 = vmatmul.mubr.f32.gmra.mrb[8].mxu1 %v358_v38 }
  0x66   : > { %584 = vmatprep.mubr.f32.mxu1 %v362_v39 }
  0x67   : > { %782 = vmatmul.mubr.f32.gmra.mrb[22].mxu0 %v381_v43 }
  0x68   : > { %787 = vmatprep.mubr.f32.mxu0 %v1682_v1 }
  0x69   : > { %585 = vmatmul.mubr.f32.gmra.mrb[10].mxu1 %v361_v41  ;;  %v881_v41 = vld [vmem:[%s2287_s2 + $0x28] sm:$0xff] }
  0x6a   : > { %590 = vmatprep.mubr.f32.mxu1 %v365_v42  ;;  %v2058_v42 = vld [vmem:[%s2006_s16 + $0x28] sm:$0xff] }
  0x6b   : > { %788 = vmatmul.mubr.f32.gmra.mrb[24].mxu0 %v384_v46  ;;  %v912_v46 = vmul.f32 %v2050_v36, %v880_v35 }
  0x6c   : > { %793 = vmatprep.mubr.f32.mxu0 %v1682_v1 }
  0x6d   : > { %591 = vmatmul.mubr.f32.gmra.mrb[12].mxu1 %v364_v44 }
  0x6e   : > { %596 = vmatprep.mubr.f32.mxu1 %v368_v45 }
  0x6f   : > { %794 = vmatmul.mubr.f32.gmra.mrb[26].mxu0 %v387_v49 }
  0x70   : > { %799 = vmatprep.mubr.f32.mxu0 %v1682_v1 }
  0x71   : > { %597 = vmatmul.mubr.f32.gmra.mrb[14].mxu1 %v367_v47 }
  0x72   : > { %602 = vmatprep.mubr.f32.mxu1 %v371_v48 }
  0x73   : > { %800 = vmatmul.mubr.f32.gmra.mrb[28].mxu0 %v390_v52  ;;  %v2068_v52 = vld [vmem:[%s2006_s16 + $0x30] sm:$0xff] }
  0x74   : > { %805 = vmatprep.mubr.f32.mxu0 %v1682_v1  ;;  %v379_v1 = vld [vmem:[%s2286_s1 + $0x108] sm:$0xff] }
  0x75   : > { %603 = vmatmul.mubr.f32.gmra.mrb[16].mxu1 %v370_v50  ;;  %v913_v50 = vmul.f32 %v2058_v42, %v881_v41 }
  0x76   : > { %608 = vmatprep.mubr.f32.mxu1 %v374_v51  ;;  %v882_v51 = vld [vmem:[%s2287_s2 + $0x30] sm:$0xff] }
  0x77   : > { %806 = vmatmul.mubr.f32.gmra.mrb[30].mxu0 %v393_v55 }
  0x79   : > { %609 = vmatmul.mubr.f32.gmra.mrb[18].mxu1 %v373_v53 }
  0x7a   : > { %614 = vmatprep.mubr.f32.mxu1 %v377_v54 }
  0x7d   : > { %615 = vmatmul.mubr.f32.gmra.mrb[20].mxu1 %v376_v56 }
  0x7e   : > { %620 = vmatprep.mubr.f32.mxu1 %v380_v57 }
  0x81   : > { %621 = vmatmul.mubr.f32.gmra.mrb[22].mxu1 %v379_v1 }
  0x82   : > { %626 = vmatprep.mubr.f32.mxu1 %v383_v58  ;;  %v883_v58 = vld [vmem:[%s2287_s2 + $0x38] sm:$0xff] }
  0x85   : > { %627 = vmatmul.mubr.f32.gmra.mrb[24].mxu1 %v382_v59  ;;  %v2076_v59 = vld [vmem:[%s2006_s16 + $0x38] sm:$0xff] }
  0x86   : > { %632 = vmatprep.mubr.f32.mxu1 %v386_v60 }
  0x89   : > { %633 = vmatmul.mubr.f32.gmra.mrb[26].mxu1 %v385_v61  ;;  %v914_v61 = vmul.f32 %v2068_v52, %v882_v51 }
  0x8a   : > { %638 = vmatprep.mubr.f32.mxu1 %v389_v62 }
  0x8d   : > { %639 = vmatmul.mubr.f32.gmra.mrb[28].mxu1 %v388_v63 }
  0x8e   : > { %644 = vmatprep.mubr.f32.mxu1 %v392_v0 }
  0x91   : > { %645 = vmatmul.mubr.f32.gmra.mrb[30].mxu1 %v391_v2  ;;  %v884_v2 = vld [vmem:[%s2287_s2 + $0x40] sm:$0xff] }
 0x10e   : > { %v717_v3 = vpop.f32.mrb[0].mxu0 }
 0x10f   : > { %v719_v4 = vpop.f32.mrb[1].mxu0 }
 0x112   : > { %v723_v5 = vpop.f32.mrb[2].mxu0 }
 0x113   : > { %v725_v6 = vpop.f32.mrb[3].mxu0 }
 0x116   : > { %v729_v7 = vpop.f32.mrb[4].mxu0 }
 0x117   : > { %v731_v8 = vpop.f32.mrb[5].mxu0 }
 0x11a   : > { %v1998_v9 = vpop.f32.mrb[6].mxu0 }
 0x11b   : > { %v2000_v10 = vpop.f32.mrb[7].mxu0 }
 0x11e   : > { %v2008_v11 = vpop.f32.mrb[8].mxu0 }
 0x11f   : > { %v2016_v14 = vpop.f32.mrb[9].mxu0 }
 0x122   : > { %v2025_v18 = vpop.f32.mrb[10].mxu0 }
 0x123   : > { %v2034_v23 = vpop.f32.mrb[11].mxu0 }
 0x126   : > { %v2043_v31 = vpop.f32.mrb[12].mxu0 }
 0x127   : > { %v2052_v37 = vpop.f32.mrb[13].mxu0 }
 0x128   : > { %v556_v19 = vpop.f32.mrb[0].mxu1 }
 0x129   : > { %v718_v24 = vadd.f32 %v717_v3, %v556_v19  ;;  %v558_v25 = vpop.f32.mrb[1].mxu1  ;;  %v972_v19 = vmul.f32 %v2014_v13, %v884_v2  ;;  %v890_v2 = vld [vmem:[%s2287_s2 + $0x70] sm:$0xff] }
 0x12a   : > { %v720_v28 = vadd.f32 %v719_v4, %v558_v25  ;;  %v2061_v47 = vpop.f32.mrb[14].mxu0 }
 0x12b   : > { %v916_v29 = vadd.f32 %v908_v17, %v718_v24  ;;  %v2070_v53 = vpop.f32.mrb[15].mxu0 }
 0x12c   : > { %v917_v32 = vadd.f32 %v909_v20, %v720_v28  ;;  %v562_v33 = vpop.f32.mrb[2].mxu1 }
 0x12d   : > { %v1347_v38 = vmul.f32 -1.442695, %v916_v29  ;;  %v724_v39 = vadd.f32 %v723_v5, %v562_v33  ;;  %v564_v40 = vpop.f32.mrb[3].mxu1 }
 0x12e   : > { %v1348_v43 = vmul.f32 -1.442695, %v917_v32  ;;  %v726_v44 = vadd.f32 %v725_v6, %v564_v40  ;;  %v2079_v62 = vpop.f32.mrb[16].mxu0  ;;  %v887_v32 = vld [vmem:[%s2287_s2 + $0x58] sm:$0xff] }
 0x12f   : > { %1530 = vpow2.f32 %v1347_v38  ;;  %v918_v45 = vadd.f32 %v910_v30, %v724_v39  ;;  %v2084_v3 = vpop.f32.mrb[17].mxu0 }
 0x130   : > { %1532 = vpow2.f32 %v1348_v43  ;;  %v919_v48 = vadd.f32 %v911_v34, %v726_v44  ;;  %v568_v49 = vpop.f32.mrb[4].mxu1 }
 0x131   : > { %v1349_v54 = vmul.f32 -1.442695, %v918_v45  ;;  %v730_v55 = vadd.f32 %v729_v7, %v568_v49  ;;  %v570_v56 = vpop.f32.mrb[5].mxu1  ;;  %v915_v7 = vmul.f32 %v2076_v59, %v883_v58  ;;  %v888_v45 = vld [vmem:[%s2287_s2 + $0x60] sm:$0xff] }
 0x132   : > { %v1350_v57 = vmul.f32 -1.442695, %v919_v48  ;;  %v732_v1 = vadd.f32 %v731_v8, %v570_v56  ;;  %v885_v8 = vld [vmem:[%s2287_s2 + $0x48] sm:$0xff]  ;;  %v2093_v20 = vpop.f32.mrb[18].mxu0  ;;  %v976_v58 = vmul.f32 %v2050_v36, %v888_v45 }
 0x133   : > { %1534 = vpow2.f32 %v1349_v54  ;;  %v920_v60 = vadd.f32 %v912_v46, %v730_v55  ;;  %v973_v24 = vmul.f32 %v2022_v16, %v885_v8  ;;  %v2099_v25 = vpop.f32.mrb[19].mxu0  ;;  %v889_v54 = vld [vmem:[%s2287_s2 + $0x68] sm:$0xff] }
 0x134   : > { %1536 = vpow2.f32 %v1350_v57  ;;  %v921_v63 = vadd.f32 %v913_v50, %v732_v1  ;;  %v574_v0 = vpop.f32.mrb[6].mxu1 }
 0x135   : > { %v1351_v4 = vmul.f32 -1.442695, %v920_v60  ;;  %v736_v5 = vadd.f32 %v1998_v9, %v574_v0  ;;  %v576_v6 = vpop.f32.mrb[7].mxu1  ;;  %v886_v9 = vld [vmem:[%s2287_s2 + $0x50] sm:$0xff]  ;;  %v977_v0 = vmul.f32 %v2058_v42, %v889_v54 }
 0x136   : > { %v1352_v12 = vmul.f32 -1.442695, %v921_v63  ;;  %v738_v15 = vadd.f32 %v2000_v10, %v576_v6  ;;  %v974_v39 = vmul.f32 %v2032_v22, %v886_v9  ;;  %v2107_v40 = vpop.f32.mrb[20].mxu0 }
 0x137   : > { %1538 = vpow2.f32 %v1351_v4  ;;  %v922_v17 = vadd.f32 %v914_v61, %v736_v5  ;;  %v2113_v46 = vpop.f32.mrb[21].mxu0 }
 0x138   : > { %v580_v21 = vpop.f32.mrb[8].mxu1  ;;  %1540 = vpow2.f32 %v1352_v12  ;;  %v923_v29 = vadd.f32 %v915_v7, %v738_v15  ;;  %v891_v12 = vld [vmem:[%s2287_s2 + $0x78] sm:$0xff] }
 0x139   : > { %v1531_v26 = vpop.eup %1530  ;;  %v1353_v28 = vmul.f32 -1.442695, %v922_v17  ;;  %v742_v10 = vadd.f32 %v2008_v11, %v580_v21  ;;  %v582_v30 = vpop.f32.mrb[9].mxu1  ;;  %v975_v11 = vmul.f32 %v2040_v27, %v887_v32 }
 0x13a   : > { %v1533_v33 = vpop.eup %1532  ;;  %v948_v34 = vadd.f32 1.0, %v1531_v26  ;;  %v744_v35 = vadd.f32 %v2016_v14, %v582_v30  ;;  %v1354_v49 = vmul.f32 -1.442695, %v923_v29  ;;  %v2121_v60 = vpop.f32.mrb[22].mxu0  ;;  %v979_v29 = vmul.f32 %v2076_v59, %v891_v12 }
 0x13b   : > { %1542 = vpow2.f32 %v1353_v28  ;;  %v980_v38 = vadd.f32 %v972_v19, %v742_v10  ;;  %v949_v41 = vadd.f32 1.0, %v1533_v33  ;;  %v2127_v4 = vpop.f32.mrb[23].mxu0 }
 0x13c   : > { %v981_v43 = vadd.f32 %v973_v24, %v744_v35  ;;  %v586_v44 = vpop.f32.mrb[10].mxu1  ;;  %1544 = vrcp.f32 %v948_v34  ;;  %v978_v24 = vmul.f32 %v2068_v52, %v890_v2 }
 0x13d   : > { %v1535_v48 = vpop.eup %1534  ;;  %v1355_v14 = vmul.f32 -1.442695, %v980_v38  ;;  %v748_v50 = vadd.f32 %v2025_v18, %v586_v44  ;;  %v588_v51 = vpop.f32.mrb[11].mxu1 }
 0x13e   : > { %v1537_v55 = vpop.eup %1536  ;;  %v1356_v56 = vmul.f32 -1.442695, %v981_v43  ;;  %v750_v57 = vadd.f32 %v2034_v23, %v588_v51  ;;  %v950_v61 = vadd.f32 1.0, %v1535_v48  ;;  %v2135_v9 = vpop.f32.mrb[24].mxu0 }
 0x13f   : > { %1546 = vpow2.f32 %v1355_v14  ;;  %v982_v1 = vadd.f32 %v974_v39, %v748_v50  ;;  %v951_v23 = vadd.f32 1.0, %v1537_v55  ;;  %v2138_v10 = vpop.f32.mrb[25].mxu0 }
 0x140   : > { %1548 = vrcp.f32 %v949_v41  ;;  %v983_v63 = vadd.f32 %v975_v11, %v750_v57  ;;  %v592_v18 = vpop.f32.mrb[12].mxu1 }
 0x141   : > { %v1539_v5 = vpop.eup %1538  ;;  %1550 = vpow2.f32 %v1354_v49  ;;  %v1357_v6 = vmul.f32 -1.442695, %v982_v1  ;;  %v754_v7 = vadd.f32 %v2043_v31, %v592_v18  ;;  %v594_v8 = vpop.f32.mrb[13].mxu1 }
 0x142   : > { %1552 = vpow2.f32 %v1356_v56  ;;  %v1358_v15 = vmul.f32 -1.442695, %v983_v63  ;;  %v756_v17 = vadd.f32 %v2052_v37, %v594_v8  ;;  %v1541_v19 = vpop.eup %1540  ;;  %v952_v26 = vadd.f32 1.0, %v1539_v5  ;;  %v2142_v43 = vpop.f32.mrb[26].mxu0 }
 0x143   : > { %1554 = vpow2.f32 %v1357_v6  ;;  %v984_v21 = vadd.f32 %v976_v58, %v754_v7  ;;  %v953_v34 = vadd.f32 1.0, %v1541_v19  ;;  %v2146_v48 = vpop.f32.mrb[27].mxu0 }
 0x144   : > { %1556 = vrcp.f32 %v950_v61  ;;  %v985_v28 = vadd.f32 %v977_v0, %v756_v17  ;;  %v598_v31 = vpop.f32.mrb[14].mxu1 }
 0x145   : > { %v1543_v30 = vpop.eup %1542  ;;  %1558 = vrcp.f32 %v951_v23  ;;  %v1359_v32 = vmul.f32 -1.442695, %v984_v21  ;;  %v760_v37 = vadd.f32 %v2061_v47, %v598_v31  ;;  %v600_v33 = vpop.f32.mrb[15].mxu1 }
 0x146   : > { %1560 = vpow2.f32 %v1358_v15  ;;  %v1360_v35 = vmul.f32 -1.442695, %v985_v28  ;;  %v762_v38 = vadd.f32 %v2070_v53, %v600_v33  ;;  %v954_v39 = vadd.f32 1.0, %v1543_v30  ;;  %v2144_v44 = vpop.eup %1544  ;;  %v2152_v57 = vpop.f32.mrb[28].mxu0 }
 0x147   : > { %1562 = vpow2.f32 %v1359_v32  ;;  %v986_v41 = vadd.f32 %v978_v24, %v760_v37  ;;  %v2154_v61 = vpop.f32.mrb[29].mxu0 }
 0x148   : > { %1564 = vrcp.f32 %v952_v26  ;;  %v987_v11 = vadd.f32 %v979_v29, %v762_v38  ;;  %v604_v45 = vpop.f32.mrb[16].mxu1 }
 0x149   : > { %v1547_v49 = vpop.eup %1546  ;;  %1566 = vpow2.f32 %v1360_v35  ;;  %v1361_v47 = vmul.f32 -1.442695, %v986_v41  ;;  %v766_v14 = vadd.f32 %v2079_v62, %v604_v45  ;;  %v606_v50 = vpop.f32.mrb[17].mxu1 }
 0x14a   : > { %v2149_v51 = vpop.eup %1548  ;;  %1568 = vrcp.f32 %v953_v34  ;;  %v1012_v53 = vadd.f32 1.0, %v1547_v49  ;;  %v1362_v54 = vmul.f32 -1.442695, %v987_v11  ;;  %v768_v55 = vadd.f32 %v2084_v3, %v606_v50  ;;  %v2162_v6 = vpop.f32.mrb[30].mxu0 }
 0x14b   : > { %v1551_v56 = vpop.eup %1550  ;;  %1570 = vrcp.f32 %v954_v39  ;;  %v2164_v12 = vpop.f32.mrb[31].mxu0 }
 0x14c   : > { %v1553_v1 = vpop.eup %1552  ;;  %1572 = vrcp.f32 %v1012_v53  ;;  %v610_v58 = vpop.f32.mrb[18].mxu1 }
 0x14d   : > { %v1555_v63 = vpop.eup %1554  ;;  %v1013_v18 = vadd.f32 1.0, %v1553_v1  ;;  %1574 = vpow2.f32 %v1361_v47  ;;  %v772_v62 = vadd.f32 %v2093_v20, %v610_v58  ;;  %v612_v0 = vpop.f32.mrb[19].mxu1  ;;  %v893_v58 = vld [vmem:[%s2287_s2 + $0x88] sm:$0xff] }
 0x14e   : > { %v2157_v2 = vpop.eup %1556  ;;  %v1014_v5 = vadd.f32 1.0, %v1555_v63  ;;  %1576 = vpow2.f32 %v1362_v54  ;;  %v774_v3 = vadd.f32 %v2099_v25, %v612_v0 }
 0x14f   : > { %v2160_v23 = vpop.eup %1558  ;;  %1578 = vrcp.f32 %v1013_v18 }
 0x150   : > { %v1561_v7 = vpop.eup %1560  ;;  %1580 = vrcp.f32 %v1014_v5  ;;  %v616_v8 = vpop.f32.mrb[20].mxu1 }
 0x151   : > { %v1563_v15 = vpop.eup %1562  ;;  %v1015_v17 = vadd.f32 1.0, %v1561_v7  ;;  %1582 = vtanh.f32 %v766_v14  ;;  %v778_v20 = vadd.f32 %v2107_v40, %v616_v8  ;;  %v618_v19 = vpop.f32.mrb[21].mxu1  ;;  %v955_v14 = vadd.f32 1.0, %v1551_v56 }
 0x152   : > { %v2167_v21 = vpop.eup %1564  ;;  %v1016_v24 = vadd.f32 1.0, %v1563_v15  ;;  %1584 = vtanh.f32 %v768_v55  ;;  %v780_v25 = vadd.f32 %v2113_v46, %v618_v19 }
 0x153   : > { %v1567_v26 = vpop.eup %1566  ;;  %1586 = vrcp.f32 %v1015_v17 }
 0x154   : > { %v2170_v28 = vpop.eup %1568  ;;  %1588 = vrcp.f32 %v1016_v24  ;;  %v1017_v31 = vadd.f32 1.0, %v1567_v26  ;;  %v622_v29 = vpop.f32.mrb[22].mxu1 }
 0x155   : > { %v2172_v30 = vpop.eup %1570  ;;  %1590 = vtanh.f32 %v772_v62  ;;  %v784_v32 = vadd.f32 %v2121_v60, %v622_v29  ;;  %v624_v40 = vpop.f32.mrb[23].mxu1  ;;  %v895_v29 = vld [vmem:[%s2287_s2 + $0x98] sm:$0xff] }
 0x156   : > { %v1573_v37 = vpop.eup %1572  ;;  %1592 = vrcp.f32 %v1017_v31  ;;  %v786_v33 = vadd.f32 %v2127_v4, %v624_v40 }
 0x157   : > { %v1575_v34 = vpop.eup %1574  ;;  %1594 = vtanh.f32 %v774_v3  ;;  %v1036_v60 = vmul.f32 %v1573_v37, %v2014_v13  ;;  %v892_v13 = vld [vmem:[%s2287_s2 + $0x80] sm:$0xff] }
 0x158   : > { %v1577_v46 = vpop.eup %1576  ;;  %v1018_v35 = vadd.f32 1.0, %v1575_v34  ;;  %1596 = vtanh.f32 %v778_v20  ;;  %v628_v38 = vpop.f32.mrb[24].mxu1 }
 0x159   : > { %v1579_v39 = vpop.eup %1578  ;;  %v1019_v41 = vadd.f32 1.0, %v1577_v46  ;;  %1598 = vtanh.f32 %v780_v25  ;;  %v790_v11 = vadd.f32 %v2135_v9, %v628_v38  ;;  %v630_v45 = vpop.f32.mrb[25].mxu1 }
 0x15a   : > { %v1581_v49 = vpop.eup %1580  ;;  %1600 = vrcp.f32 %v1018_v35  ;;  %v792_v47 = vadd.f32 %v2138_v10, %v630_v45  ;;  %v1037_v50 = vmul.f32 %v1579_v39, %v2022_v16  ;;  %v897_v45 = vld [vmem:[%s2287_s2 + $0xa8] sm:$0xff] }
 0x15b   : > { %v1583_v4 = vpop.eup %1582  ;;  %1602 = vrcp.f32 %v1019_v41  ;;  %v1038_v63 = vmul.f32 %v1581_v49, %v2032_v22  ;;  %v894_v22 = vld [vmem:[%s2287_s2 + $0x90] sm:$0xff] }
 0x15c   : > { %v1585_v53 = vpop.eup %1584  ;;  %1604 = vtanh.f32 %v784_v32  ;;  %v1052_v54 = vmul.f32 %v1583_v4, %v2144_v44  ;;  %v634_v55 = vpop.f32.mrb[26].mxu1 }
 0x15d   : > { %v1587_v1 = vpop.eup %1586  ;;  %1606 = vtanh.f32 %v786_v33  ;;  %v1053_v9 = vmul.f32 %v1585_v53, %v2149_v51  ;;  %v796_v16 = vadd.f32 %v2142_v43, %v634_v55  ;;  %v636_v10 = vpop.f32.mrb[27].mxu1 }
 0x15e   : > { %v1589_v56 = vpop.eup %1588  ;;  %v2192_v44 = vadd.f32 %v1052_v54, %v1036_v60  ;;  %v798_v18 = vadd.f32 %v2146_v48, %v636_v10  ;;  %1608 = vrcp.f32 %v955_v14  ;;  %v1039_v3 = vmul.f32 %v1587_v1, %v2040_v27 }
 0x15f   : > { %v1591_v62 = vpop.eup %1590  ;;  %v2199_v0 = vadd.f32 %v1053_v9, %v1037_v50  ;;  %v1040_v17 = vmul.f32 %v1589_v56, %v2050_v36  ;;  %v898_v50 = vld [vmem:[%s2287_s2 + $0xb0] sm:$0xff] }
 0x160   : > { %v1593_v51 = vpop.eup %1592  ;;  %v1068_v43 = vmul.f32 %v2192_v44, %v892_v13  ;;  %1156 = vst [vmem:[%s2185_s8] sm:$0xff] %v2192_v44  ;;  %v1054_v5 = vmul.f32 %v1591_v62, %v2157_v2  ;;  %v640_v7 = vpop.f32.mrb[28].mxu1 }
 0x161   : > { %v1595_v8 = vpop.eup %1594  ;;  %v1069_v15 = vmul.f32 %v2199_v0, %v893_v58  ;;  %1157 = vst [vmem:[%s2185_s8 + $0x8] sm:$0xff] %v2199_v0  ;;  %v802_v48 = vadd.f32 %v2152_v57, %v640_v7  ;;  %v642_v20 = vpop.f32.mrb[29].mxu1  ;;  %v1041_v32 = vmul.f32 %v1593_v51, %v2058_v42  ;;  %v899_v58 = vld [vmem:[%s2287_s2 + $0xb8] sm:$0xff] }
 0x162   : > { %v1597_v19 = vpop.eup %1596  ;;  %v1076_v2 = vadd.f32 %v1068_v43, %v790_v11  ;;  %v2214_v24 = vadd.f32 %v1054_v5, %v1038_v63  ;;  %v1055_v27 = vmul.f32 %v1595_v8, %v2160_v23  ;;  %v804_v25 = vadd.f32 %v2154_v61, %v642_v20  ;;  %v896_v61 = vld [vmem:[%s2287_s2 + $0xa0] sm:$0xff] }
 0x163   : > { %v1599_v26 = vpop.eup %1598  ;;  %v1077_v31 = vadd.f32 %v1069_v15, %v792_v47  ;;  %v1056_v57 = vmul.f32 %v1597_v19, %v2167_v21 }
 0x164   : > { %v1601_v36 = vpop.eup %1600  ;;  %v1363_v40 = vmul.f32 -1.442695, %v1076_v2  ;;  %v1070_v37 = vmul.f32 %v2214_v24, %v894_v22  ;;  %1158 = vst [vmem:[%s2185_s8 + $0x10] sm:$0xff] %v2214_v24  ;;  %v2226_v23 = vadd.f32 %v1055_v27, %v1039_v3  ;;  %v646_v33 = vpop.f32.mrb[30].mxu1  ;;  %v1057_v42 = vmul.f32 %v1599_v26, %v2170_v28 }
 0x165   : > { %v1603_v34 = vpop.eup %1602  ;;  %v1364_v46 = vmul.f32 -1.442695, %v1077_v31  ;;  %v2231_v21 = vadd.f32 %v1056_v57, %v1040_v17  ;;  %v808_v35 = vadd.f32 %v2162_v6, %v646_v33  ;;  %v648_v38 = vpop.f32.mrb[31].mxu1  ;;  %v1042_v49 = vmul.f32 %v1601_v36, %v2068_v52 }
 0x166   : > { %v1605_v39 = vpop.eup %1604  ;;  %1610 = vpow2.f32 %v1363_v40  ;;  %v1078_v41 = vadd.f32 %v1070_v37, %v796_v16  ;;  %v1071_v11 = vmul.f32 %v2226_v23, %v895_v29  ;;  %1159 = vst [vmem:[%s2185_s8 + $0x18] sm:$0xff] %v2226_v23  ;;  %v1065_v6 = vadd.f32 %v1057_v42, %v1041_v32 }
 0x167   : > { %v1607_v60 = vpop.eup %1606  ;;  %1612 = vpow2.f32 %v1364_v46  ;;  %v1072_v28 = vmul.f32 %v2231_v21, %v896_v61  ;;  %1160 = vst [vmem:[%s2185_s8 + $0x20] sm:$0xff] %v2231_v21  ;;  %v1058_v47 = vmul.f32 %v1605_v39, %v2172_v30  ;;  %v810_v53 = vadd.f32 %v2164_v12, %v648_v38 }
 0x168   : > { %v1365_v4 = vmul.f32 -1.442695, %v1078_v41  ;;  %v1079_v14 = vadd.f32 %v1071_v11, %v798_v18  ;;  %v1609_v54 = vpop.eup %1608  ;;  %v1073_v55 = vmul.f32 %v1065_v6, %v897_v45  ;;  %1161 = vst [vmem:[%s2185_s8 + $0x28] sm:$0xff] %v1065_v6  ;;  %v1043_v9 = vmul.f32 %v1603_v34, %v2076_v59 }
 0x169   : > { %v1080_v52 = vadd.f32 %v1072_v28, %v802_v48  ;;  %v1066_v1 = vadd.f32 %v1058_v47, %v1042_v49  ;;  %v1059_v30 = vmul.f32 %v1609_v54, %v1607_v60 }
 0x16a   : > { %1614 = vpow2.f32 %v1365_v4  ;;  %v1366_v13 = vmul.f32 -1.442695, %v1079_v14  ;;  %v1081_v10 = vadd.f32 %v1073_v55, %v804_v25 }
 0x16b   : > { %v1367_v16 = vmul.f32 -1.442695, %v1080_v52  ;;  %v1074_v56 = vmul.f32 %v1066_v1, %v898_v50  ;;  %1162 = vst [vmem:[%s2185_s8 + $0x30] sm:$0xff] %v1066_v1  ;;  %v1067_v12 = vadd.f32 %v1059_v30, %v1043_v9 }
 0x16c   : > { %1616 = vpow2.f32 %v1366_v13  ;;  %v1368_v63 = vmul.f32 -1.442695, %v1081_v10 }
 0x16d   : > { %1618 = vpow2.f32 %v1367_v16  ;;  %v1082_v18 = vadd.f32 %v1074_v56, %v808_v35  ;;  %v1075_v62 = vmul.f32 %v1067_v12, %v899_v58  ;;  %1163 = vst [vmem:[%s2185_s8 + $0x38] sm:$0xff] %v1067_v12 }
 0x16e   : > { %1620 = vtanh.f32 %v2192_v44 }
 0x16f   : > { %1622 = vpow2.f32 %v1368_v63  ;;  %v1369_v59 = vmul.f32 -1.442695, %v1082_v18  ;;  %v1083_v43 = vadd.f32 %v1075_v62, %v810_v53 }
 0x170   : > { %v1611_v51 = vpop.eup %1610  ;;  %1624 = vtanh.f32 %v2199_v0 }
 0x171   : > { %v1613_v5 = vpop.eup %1612  ;;  %v1108_v3 = vadd.f32 1.0, %v1611_v51  ;;  %1626 = vpow2.f32 %v1369_v59  ;;  %v1370_v8 = vmul.f32 -1.442695, %v1083_v43 }
 0x172   : > { %v1109_v7 = vadd.f32 1.0, %v1613_v5  ;;  %1628 = vtanh.f32 %v2214_v24 }
 0x173   : > { %1630 = vrcp.f32 %v1108_v3 }
 0x174   : > { %v1615_v15 = vpop.eup %1614  ;;  %1632 = vrcp.f32 %v1109_v7 }
 0x175   : > { %v1110_v22 = vadd.f32 1.0, %v1615_v15  ;;  %1634 = vpow2.f32 %v1370_v8 }
 0x176   : > { %v1617_v44 = vpop.eup %1616  ;;  %1636 = vtanh.f32 %v2226_v23 }
 0x177   : > { %v1619_v48 = vpop.eup %1618  ;;  %1638 = vrcp.f32 %v1110_v22  ;;  %v1111_v0 = vadd.f32 1.0, %v1617_v44 }
 0x178   : > { %v1621_v17 = vpop.eup %1620  ;;  %v1112_v20 = vadd.f32 1.0, %v1619_v48  ;;  %1640 = vtanh.f32 %v2231_v21 }
 0x179   : > { %v1623_v19 = vpop.eup %1622  ;;  %1642 = vrcp.f32 %v1111_v0 }
 0x17a   : > { %v1625_v2 = vpop.eup %1624  ;;  %1644 = vrcp.f32 %v1112_v20  ;;  %v1113_v24 = vadd.f32 1.0, %v1623_v19 }
 0x17b   : > { %v1627_v27 = vpop.eup %1626  ;;  %1646 = vtanh.f32 %v1065_v6 }
 0x17c   : > { %v1629_v25 = vpop.eup %1628  ;;  %1648 = vrcp.f32 %v1113_v24  ;;  %v1114_v26 = vadd.f32 1.0, %v1627_v27 }
 0x17d   : > { %v1631_v31 = vpop.eup %1630  ;;  %1650 = vtanh.f32 %v1066_v1 }
 0x17e   : > { %v1633_v29 = vpop.eup %1632  ;;  %v1140_v57 = vmul.f32 %v1631_v31, %v1621_v17  ;;  %1652 = vrcp.f32 %v1114_v26 }
 0x17f   : > { %v1635_v32 = vpop.eup %1634  ;;  %v1141_v36 = vmul.f32 %v1633_v29, %v1625_v2  ;;  %1654 = vtanh.f32 %v1067_v12 }
 0x180   : > { %v1637_v40 = vpop.eup %1636  ;;  %1148 = vst [vmem:[%s2266_s6] sm:$0xff] %v1140_v57  ;;  %v1115_v37 = vadd.f32 1.0, %v1635_v32 }
 0x181   : > { %v1639_v23 = vpop.eup %1638  ;;  %1149 = vst [vmem:[%s2266_s6 + $0x8] sm:$0xff] %v1141_v36 }
 0x182   : > { %v1641_v61 = vpop.eup %1640  ;;  %v1142_v33 = vmul.f32 %v1639_v23, %v1629_v25  ;;  %1656 = vrcp.f32 %v1115_v37 }
 0x183   : > { %v1643_v34 = vpop.eup %1642 }
 0x184   : > { %v1645_v46 = vpop.eup %1644  ;;  %1150 = vst [vmem:[%s2266_s6 + $0x10] sm:$0xff] %v1142_v33  ;;  %v1143_v21 = vmul.f32 %v1643_v34, %v1637_v40 }
 0x185   : > { %v1647_v42 = vpop.eup %1646  ;;  %v1144_v35 = vmul.f32 %v1645_v46, %v1641_v61 }
 0x186   : > { %v1649_v38 = vpop.eup %1648  ;;  %1151 = vst [vmem:[%s2266_s6 + $0x18] sm:$0xff] %v1143_v21 }
 0x187   : > { %v1651_v39 = vpop.eup %1650  ;;  %1152 = vst [vmem:[%s2266_s6 + $0x20] sm:$0xff] %v1144_v35  ;;  %v1145_v41 = vmul.f32 %v1649_v38, %v1647_v42 }
 0x188   : > { %v1653_v11 = vpop.eup %1652 }
 0x189   : > { %1153 = vst [vmem:[%s2266_s6 + $0x28] sm:$0xff] %v1145_v41  ;;  %v1146_v45 = vmul.f32 %v1653_v11, %v1651_v39  ;;  %v1655_v49 = vpop.eup %1654 }
 0x18b   : > { %1154 = vst [vmem:[%s2266_s6 + $0x30] sm:$0xff] %v1146_v45 }
 0x18c   : > { %v1657_v60 = vpop.eup %1656 }
 0x18d   : > { %v1147_v28 = vmul.f32 %v1657_v60, %v1655_v49 }
 0x18f   : > { %1155 = vst [vmem:[%s2266_s6 + $0x38] sm:$0xff] %v1147_v28 }
 0x190 PF: > { %s16_s20 = sadd.s32 1, %s1680_s20   ;;  %s2291_s18 = smov %s1676_s19 }
 0x191   : > { %p13_p5 = scmp.ge.s32.totalorder %s16_s20, 4   ;;  %s2292_s19 = smov %s2294_s21 }
 0x193   :  { %15 = sbr.rel (!%p13_p5) target bundleno = 2 (0x2), region = 84 }

</bundles_post_ra>
